<compile_context>
chip_gen: v5e
topology: v5e:2x2
jax: 0.10.0
libtpu: 0.0.40
codegen_flags: <defaults>
</compile_context>

<pallas_src>
from functools import partial

import jax
import jax.numpy as jnp
from jax import lax
from jax.experimental import pallas as pl
from jax.experimental.pallas import tpu as pltpu


N_CORES = 2            # leading "parallel" grid axis (v7x: 2 TCs/chip; 1-TC chips
                       # just run it as a serial loop of 2)
K_TILE_TARGET = 8192   # weight-stream K tile (multiple of 128)


def _round_up(x, m):
    return ((x + m - 1) // m) * m


def _plan_k_tiling(k, n_cores=N_CORES, target=K_TILE_TARGET):
    """K (in_features) tiling plan.

    Returns (k_pad, tk, nk_per_core) with tk a multiple of 128, tk <= target and
    k_pad = n_cores * nk_per_core * tk >= k.
    """
    k128 = _round_up(k, 128)
    n_tiles = _round_up(max(n_cores, -(-k128 // target)), n_cores)
    tk = _round_up(-(-k128 // n_tiles), 128)
    return n_tiles * tk, tk, n_tiles // n_cores


# ---------------------------------------------------------------------------
# Kernel 1: K-streaming accumulation (both encoders + Gram of F), K-tiled,
#           2-way core-parallel.  Emits per-core partial accumulators.
# ---------------------------------------------------------------------------
def _stream_kernel(f_ref, wcat_ref, accp_ref, gramp_ref, acc_ref, gram_ref):
    k = pl.program_id(1)
    nk = pl.num_programs(1)

    @pl.when(k == 0)
    def _init():
        acc_ref[...] = jnp.zeros_like(acc_ref)
        gram_ref[...] = jnp.zeros_like(gram_ref)

    f = f_ref[...]                                     # (2MP, tk) f32, read once

    # one MXU op for BOTH encoders: F_bf16 @ [W_audio | W_video]  -> (2MP, 2E)
    acc_ref[...] += jnp.dot(f.astype(jnp.bfloat16), wcat_ref[...],
                            preferred_element_type=jnp.float32)

    # one MXU op for the full (2MP, 2MP) Gram of F (f32 operands / accumulation;
    # default Mosaic f32 matmul precision — verified against the f32 reference).
    gram_ref[...] += lax.dot_general(
        f, f, (((1,), (1,)), ((), ())), preferred_element_type=jnp.float32)

    @pl.when(k == nk - 1)
    def _emit():
        accp_ref[...] = acc_ref[...]                   # this core's partial
        gramp_ref[...] = gram_ref[...]


# ---------------------------------------------------------------------------
# Kernel 2: tiny epilogue — combine per-core partials, bias + projector + ReLU,
#           NT-Xent loss.  Runs once (no grid), everything fits in one block.
# ---------------------------------------------------------------------------
def _epilogue_kernel(accp_ref, gramp_ref, b_ae_ref, b_ve_ref,
                     w_pa_ref, b_pa_ref, w_pv_ref, b_pv_ref,
                     a_out_ref, v_out_ref, loss_ref,
                     *, batch, n_div, inv_temp):
    mp = a_out_ref.shape[0]                 # padded rows per modality
    e = b_ae_ref.shape[1]                   # encoder width

    acc = accp_ref[0]                       # (2MP, 2E)
    gram = gramp_ref[0]                     # (2MP, 2MP)
    for c in range(1, accp_ref.shape[0]):   # static, tiny
        acc = acc + accp_ref[c]
        gram = gram + gramp_ref[c]

    # ---- projector epilogue: bias, Linear, bias, ReLU ----------------------
    # F rows [:mp] = imgs, [mp:] = mel; Wcat cols [:e] = W_audio, [e:] = W_video.
    enc_a = acc[mp:, :e] + b_ae_ref[...]    # audioencoder(mel)
    enc_v = acc[:mp, e:] + b_ve_ref[...]    # videoencoder(imgs)
    proj_a = jnp.dot(enc_a.astype(jnp.bfloat16), w_pa_ref[...],
                     preferred_element_type=jnp.float32) + b_pa_ref[...]
    proj_v = jnp.dot(enc_v.astype(jnp.bfloat16), w_pv_ref[...],
                     preferred_element_type=jnp.float32) + b_pv_ref[...]
    a_out_ref[...] = jnp.maximum(proj_a, 0.0).astype(a_out_ref.dtype)
    v_out_ref[...] = jnp.maximum(proj_v, 0.0).astype(v_out_ref.dtype)

    # ---- NT-Xent loss on the raw flattened inputs (reference forward_loss) --
    n2 = 2 * mp
    row = lax.broadcasted_iota(jnp.int32, (n2, n2), 0)
    col = lax.broadcasted_iota(jnp.int32, (n2, n2), 1)

    eps = jnp.float32(1e-16)                # ~ torch CosineSimilarity eps**2
    diag = jnp.where(row == col, gram, 0.0)
    inv_r = lax.rsqrt(jnp.maximum(jnp.sum(diag, axis=1, keepdims=True), eps))
    inv_c = lax.rsqrt(jnp.maximum(jnp.sum(diag, axis=0, keepdims=True), eps))
    sim = gram * (inv_r * jnp.float32(inv_temp)) * inv_c

    # valid columns/rows: [0, batch) for imgs, [mp, mp+batch) for mel
    valid_col = (col < batch) | ((col >= mp) & (col < mp + batch))
    neg = jnp.float32(-jnp.inf)
    logits = jnp.where(valid_col & (row != col), sim, neg)   # all off-diagonals
    m = jnp.max(logits, axis=1, keepdims=True)
    lse = m + jnp.log(jnp.sum(jnp.exp(logits - m), axis=1, keepdims=True))
    # positive: col == row + mp (img rows) or col == row - mp (mel rows)
    pos = jnp.sum(jnp.where((col == row + mp) | (col == row - mp), sim, 0.0),
                  axis=1, keepdims=True)
    rvec = lax.broadcasted_iota(jnp.int32, (n2, 1), 0)
    valid_row = (rvec < batch) | ((rvec >= mp) & (rvec < mp + batch))
    total = jnp.sum(jnp.where(valid_row, lse - pos, 0.0))
    loss_ref[...] = jnp.broadcast_to(total / jnp.float32(n_div), loss_ref.shape)


# ---------------------------------------------------------------------------
# Model wrapper (parameter setup / padding = plain JAX glue)
# ---------------------------------------------------------------------------
class FinetuneModelPallas:
    def __init__(self, key, in_features, enc_dim=128, proj_dim=128,
                 batch_size=2, world_size=1, temperature=0.5):
        # TODO(synk): real projector is Linear(114514, 2048)+ReLU and the real
        # encoders come from a torch checkpoint; scaled-down lane-aligned stand-ins
        # here, but the K-streaming structure already handles the real K.
        self.batch_size = batch_size
        self.world_size = world_size
        self.temperature = temperature
        self.in_features = in_features
        self.enc_dim = enc_dim
        self.proj_dim = proj_dim

        self.k_pad, self.tk, self.nk_per_core = _plan_k_tiling(in_features)

        ks = jax.random.split(key, 8)

        def lin_w(kw, fan_in, fan_out):
            s = 1.0 / jnp.sqrt(jnp.float32(fan_in))
            return jax.random.uniform(kw, (fan_in, fan_out), jnp.float32, -s, s)

        def lin_b(kb, fan_in, fan_out):
            s = 1.0 / jnp.sqrt(jnp.float32(fan_in))
            return jax.random.uniform(kb, (1, fan_out), jnp.float32, -s, s)

        # Encoder weights concatenated as [W_audio | W_video] along the output
        # axis and zero-padded along K — ONE (tk, 2E) bf16 tile per grid step.
        w_ae = lin_w(ks[0], in_features, enc_dim)
        w_ve = lin_w(ks[2], in_features, enc_dim)
        w_cat = jnp.concatenate([w_ae, w_ve], axis=1)
        if self.k_pad > in_features:
            w_cat = jnp.concatenate(
                [w_cat, jnp.zeros((self.k_pad - in_features, 2 * enc_dim),
                                  jnp.float32)], axis=0)
        self.w_enc_cat = w_cat.astype(jnp.bfloat16)          # (k_pad, 2E)
        self.b_aenc = lin_b(ks[1], in_features, enc_dim)      # (1, E) f32
        self.b_venc = lin_b(ks[3], in_features, enc_dim)

        # projectors: Linear + ReLU (bf16 weights, f32 bias / accumulation)
        self.w_pa = lin_w(ks[4], enc_dim, proj_dim).astype(jnp.bfloat16)
        self.b_pa = lin_b(ks[5], enc_dim, proj_dim)
        self.w_pv = lin_w(ks[6], enc_dim, proj_dim).astype(jnp.bfloat16)
        self.b_pv = lin_b(ks[7], enc_dim, proj_dim)

    def forward(self, imgs, mel):
        B = imgs.shape[0]
        imgs_flat = imgs.reshape(B, -1).astype(jnp.float32)
        mel_flat = mel.reshape(B, -1).astype(jnp.float32)
        K = imgs_flat.shape[1]
        assert K == self.in_features
        E, P = self.enc_dim, self.proj_dim
        MP = max(8, _round_up(B, 8))          # pad batch rows to f32 sublane tile

        # stacked F = [imgs ; mel], zero-padded rows and K columns; one (2MP, tk)
        # f32 tile per step is shared by the encoder matmul and Gram accumulation.
        f = jnp.zeros((2 * MP, self.k_pad), jnp.float32)
        f = f.at[:B, :K].set(imgs_flat).at[MP:MP + B, :K].set(mel_flat)

        tk, nkpc = self.tk, self.nk_per_core

        # ---- kernel 1: K-streaming accumulation (encoders + Gram) ----------
        acc_part, gram_part = pl.pallas_call(
            _stream_kernel,
            out_shape=(
                jax.ShapeDtypeStruct((N_CORES, 2 * MP, 2 * E), jnp.float32),
                jax.ShapeDtypeStruct((N_CORES, 2 * MP, 2 * MP), jnp.float32),
            ),
            grid=(N_CORES, nkpc),
            in_specs=[
                pl.BlockSpec((2 * MP, tk), lambda c, k: (0, c * nkpc + k)),
                pl.BlockSpec((tk, 2 * E), lambda c, k: (c * nkpc + k, 0)),
            ],
            out_specs=(
                pl.BlockSpec((None, 2 * MP, 2 * E), lambda c, k: (c, 0, 0)),
                pl.BlockSpec((None, 2 * MP, 2 * MP), lambda c, k: (c, 0, 0)),
            ),
            scratch_shapes=[
                pltpu.VMEM((2 * MP, 2 * E), jnp.float32),    # encoder accumulator
                pltpu.VMEM((2 * MP, 2 * MP), jnp.float32),   # Gram accumulator
            ],
            compiler_params=pltpu.CompilerParams(
                dimension_semantics=("parallel", "arbitrary"),
                vmem_limit_bytes=48 * 1024 * 1024,
            ),
        )(f, self.w_enc_cat)

        # ---- kernel 2: tiny epilogue (combine partials, projectors, loss) --
        a_pad, v_pad, loss_row = pl.pallas_call(
            partial(_epilogue_kernel,
                    batch=B,
                    n_div=2 * self.batch_size * self.world_size,
                    inv_temp=1.0 / self.temperature),
            out_shape=(
                jax.ShapeDtypeStruct((MP, P), jnp.float32),   # A (padded rows)
                jax.ShapeDtypeStruct((MP, P), jnp.float32),   # V (padded rows)
                jax.ShapeDtypeStruct((1, 128), jnp.float32),  # loss (lane slab)
            ),
        )(acc_part, gram_part, self.b_aenc, self.b_venc,
          self.w_pa, self.b_pa, self.w_pv, self.b_pv)

        return loss_row[0, 0], a_pad[:B], v_pad[:B]


# ---------------------------------------------------------------------------
if __name__ == "__main__":
    key = jax.random.PRNGKey(0)
    k_img, k_mel, k_par = jax.random.split(key, 3)

    B, C, H, W = 2, 4, 16, 16
    imgs = jax.random.normal(k_img, (B, C, H, W), dtype=jnp.float32)
    mel = jax.random.normal(k_mel, (B, C, H, W), dtype=jnp.float32)

    model = FinetuneModelPallas(k_par, in_features=C * H * W,
                                batch_size=B, world_size=1, temperature=0.5)
    loss, A, V = model.forward(imgs, mel)
    jax.block_until_ready((loss, A, V))

    assert A.shape == (B, 128) and V.shape == (B, 128) and loss.shape == ()
    assert bool(jnp.isfinite(loss))
    assert bool(jnp.all(jnp.isfinite(A))) and bool(jnp.all(jnp.isfinite(V)))

    # ---- pure-JAX references ------------------------------------------------
    E = model.enc_dim
    imgs_flat = imgs.reshape(B, -1).astype(jnp.float32)
    mel_flat = mel.reshape(B, -1).astype(jnp.float32)
    K = imgs_flat.shape[1]

    def ref_branch(x_flat, w_enc, b_enc, w_p, b_p):
        enc = jnp.dot(x_flat.astype(jnp.bfloat16), w_enc,
                      preferred_element_type=jnp.float32) + b_enc
        out = jnp.dot(enc.astype(jnp.bfloat16), w_p,
                      preferred_element_type=jnp.float32) + b_p
        return jnp.maximum(out, 0.0)

    A_ref = ref_branch(mel_flat, model.w_enc_cat[:K, :E], model.b_aenc,
                       model.w_pa, model.b_pa)
    V_ref = ref_branch(imgs_flat, model.w_enc_cat[:K, E:], model.b_venc,
                       model.w_pv, model.b_pv)
    assert bool(jnp.allclose(A, A_ref, atol=2e-2, rtol=2e-2))
    assert bool(jnp.allclose(V, V_ref, atol=2e-2, rtol=2e-2))

    # NT-Xent reference on raw flattened inputs (as in FinetuneModel.forward_loss)
    f = jnp.concatenate([imgs_flat, mel_flat], 0)
    g = jnp.einsum("id,jd->ij", f, f, precision=jax.lax.Precision.HIGHEST)
    nrm = jnp.sqrt(jnp.diag(g))
    sim = g / jnp.maximum(nrm[:, None] * nrm[None, :], 1e-8) / model.temperature
    n = 2 * B
    ridx = jnp.arange(n)
    pos = sim[ridx, (ridx + B) % n]
    simm = jnp.where(jnp.eye(n, dtype=bool), -jnp.inf, sim)
    ref_loss = jnp.sum(jax.scipy.special.logsumexp(simm, axis=1) - pos) / n
    assert abs(float(loss) - float(ref_loss)) < 1e-2 * max(1.0, abs(float(ref_loss)))

    print("KERNEL_OK")
</pallas_src>

<mosaic_0001>
module attributes {stable_mosaic.version = 11 : i64} {
  func.func @_stream_kernel(%arg0: i32, %arg1: i32, %arg2: memref<16x512xf32, #tpu.memory_space<vmem>>, %arg3: memref<512x256xbf16, #tpu.memory_space<vmem>>, %arg4: memref<1x16x256xf32, #tpu.memory_space<vmem>>, %arg5: memref<1x16x16xf32, #tpu.memory_space<vmem>>, %arg6: memref<16x256xf32, #tpu.memory_space<vmem>>, %arg7: memref<16x16xf32, #tpu.memory_space<vmem>>) attributes {dimension_semantics = [#tpu.dimension_semantics<parallel>, #tpu.dimension_semantics<arbitrary>], iteration_bounds = array<i64: 2, 1>, scalar_prefetch = 0 : i64, scratch_operands = 2 : i64, tpu.core_type = #tpu.core_type<tc>, window_params = [{transform_indices = @transform_0, window_bounds = array<i64: 16, 512>}, {transform_indices = @transform_1, window_bounds = array<i64: 512, 256>}, {transform_indices = @transform_2, window_bounds = array<i64: 1, 16, 256>}, {transform_indices = @transform_3, window_bounds = array<i64: 1, 16, 16>}]} {
    %c0_i32 = arith.constant 0 : i32
    %0 = arith.cmpi eq, %arg1, %c0_i32 : i32
    %1 = arith.extui %0 : i1 to i32
    %c0_i32_0 = arith.constant 0 : i32
    %2 = arith.cmpi ne, %1, %c0_i32_0 : i32
    scf.if %2 {
      %cst_15 = arith.constant 0.000000e+00 : f32
      %17 = vector.broadcast %cst_15 : f32 to vector<16x256xf32>
      %c0_16 = arith.constant 0 : index
      %c0_17 = arith.constant 0 : index
      %18 = vector.load %arg6[%c0_16, %c0_17] : memref<16x256xf32, #tpu.memory_space<vmem>>, vector<16x256xf32>
      tpu.vector_store %arg6[%c0_16, %c0_17], %17 {strides = array<i32>} : memref<16x256xf32, #tpu.memory_space<vmem>>, vector<16x256xf32>,
      %cst_18 = arith.constant 0.000000e+00 : f32
      %19 = vector.broadcast %cst_18 : f32 to vector<16x16xf32>
      %c0_19 = arith.constant 0 : index
      %c0_20 = arith.constant 0 : index
      %20 = vector.load %arg7[%c0_19, %c0_20] : memref<16x16xf32, #tpu.memory_space<vmem>>, vector<16x16xf32>
      tpu.vector_store %arg7[%c0_19, %c0_20], %19 {strides = array<i32>} : memref<16x16xf32, #tpu.memory_space<vmem>>, vector<16x16xf32>,
    } else {
    }
    %c0 = arith.constant 0 : index
    %c0_1 = arith.constant 0 : index
    %3 = vector.load %arg2[%c0, %c0_1] : memref<16x512xf32, #tpu.memory_space<vmem>>, vector<16x512xf32>
    %c0_2 = arith.constant 0 : index
    %c0_3 = arith.constant 0 : index
    %4 = vector.load %arg6[%c0_2, %c0_3] : memref<16x256xf32, #tpu.memory_space<vmem>>, vector<16x256xf32>
    %5 = arith.truncf %3 : vector<16x512xf32> to vector<16x512xbf16>
    %c0_4 = arith.constant 0 : index
    %c0_5 = arith.constant 0 : index
    %6 = vector.load %arg3[%c0_4, %c0_5] : memref<512x256xbf16, #tpu.memory_space<vmem>>, vector<512x256xbf16>
    %cst = arith.constant dense<0.000000e+00> : vector<16x256xf32>
    %7 = tpu.matmul %5, %6, %cst {dimension_numbers = #tpu.dot_dimension_numbers<[1], [0], [0], [1], [0, 0, 1, 1], [], []>} : vector<16x512xbf16>, vector<512x256xbf16>, vector<16x256xf32> -> vector<16x256xf32>
    %8 = arith.addf %4, %7 : vector<16x256xf32>
    %c0_6 = arith.constant 0 : index
    %c0_7 = arith.constant 0 : index
    %9 = vector.load %arg6[%c0_6, %c0_7] : memref<16x256xf32, #tpu.memory_space<vmem>>, vector<16x256xf32>
    tpu.vector_store %arg6[%c0_6, %c0_7], %8 {strides = array<i32>} : memref<16x256xf32, #tpu.memory_space<vmem>>, vector<16x256xf32>,
    %c0_8 = arith.constant 0 : index
    %c0_9 = arith.constant 0 : index
    %10 = vector.load %arg7[%c0_8, %c0_9] : memref<16x16xf32, #tpu.memory_space<vmem>>, vector<16x16xf32>
    %cst_10 = arith.constant dense<0.000000e+00> : vector<16x16xf32>
    %11 = tpu.matmul %3, %3, %cst_10 {dimension_numbers = #tpu.dot_dimension_numbers<[1], [1], [0], [0], [0, 0, 1, 0], [], []>} : vector<16x512xf32>, vector<16x512xf32>, vector<16x16xf32> -> vector<16x16xf32>
    %12 = arith.addf %10, %11 : vector<16x16xf32>
    %c0_11 = arith.constant 0 : index
    %c0_12 = arith.constant 0 : index
    %13 = vector.load %arg7[%c0_11, %c0_12] : memref<16x16xf32, #tpu.memory_space<vmem>>, vector<16x16xf32>
    tpu.vector_store %arg7[%c0_11, %c0_12], %12 {strides = array<i32>} : memref<16x16xf32, #tpu.memory_space<vmem>>, vector<16x16xf32>,
    %c0_i32_13 = arith.constant 0 : i32
    %14 = arith.cmpi eq, %arg1, %c0_i32_13 : i32
    %15 = arith.extui %14 : i1 to i32
    %c0_i32_14 = arith.constant 0 : i32
    %16 = arith.cmpi ne, %15, %c0_i32_14 : i32
    scf.if %16 {
      %c0_15 = arith.constant 0 : index
      %c0_16 = arith.constant 0 : index
      %17 = vector.load %arg6[%c0_15, %c0_16] : memref<16x256xf32, #tpu.memory_space<vmem>>, vector<16x256xf32>
      %c0_17 = arith.constant 0 : index
      %c0_18 = arith.constant 0 : index
      %c0_19 = arith.constant 0 : index
      %18 = vector.load %arg4[%c0_17, %c0_18, %c0_19] : memref<1x16x256xf32, #tpu.memory_space<vmem>>, vector<1x16x256xf32>
      %19 = vector.shape_cast %18 : vector<1x16x256xf32> to vector<16x256xf32>
      %20 = vector.shape_cast %17 : vector<16x256xf32> to vector<1x16x256xf32>
      tpu.vector_store %arg4[%c0_17, %c0_18, %c0_19], %20 {strides = array<i32>} : memref<1x16x256xf32, #tpu.memory_space<vmem>>, vector<1x16x256xf32>,
      %c0_20 = arith.constant 0 : index
      %c0_21 = arith.constant 0 : index
      %21 = vector.load %arg7[%c0_20, %c0_21] : memref<16x16xf32, #tpu.memory_space<vmem>>, vector<16x16xf32>
      %c0_22 = arith.constant 0 : index
      %c0_23 = arith.constant 0 : index
      %c0_24 = arith.constant 0 : index
      %22 = vector.load %arg5[%c0_22, %c0_23, %c0_24] : memref<1x16x16xf32, #tpu.memory_space<vmem>>, vector<1x16x16xf32>
      %23 = vector.shape_cast %22 : vector<1x16x16xf32> to vector<16x16xf32>
      %24 = vector.shape_cast %21 : vector<16x16xf32> to vector<1x16x16xf32>
      tpu.vector_store %arg5[%c0_22, %c0_23, %c0_24], %24 {strides = array<i32>} : memref<1x16x16xf32, #tpu.memory_space<vmem>>, vector<1x16x16xf32>,
    } else {
    }
    return
  }
  func.func @transform_0(%arg0: i32, %arg1: i32) -> (i32, i32) {
    %c1_i32 = arith.constant 1 : i32
    %0 = arith.muli %arg0, %c1_i32 : i32
    %1 = arith.addi %0, %arg1 : i32
    %c0_i32 = arith.constant 0 : i32
    %c0_i32_0 = arith.constant 0 : i32
    return %c0_i32, %1 : i32, i32
  }
  func.func @transform_1(%arg0: i32, %arg1: i32) -> (i32, i32) {
    %c1_i32 = arith.constant 1 : i32
    %0 = arith.muli %arg0, %c1_i32 : i32
    %1 = arith.addi %0, %arg1 : i32
    %c0_i32 = arith.constant 0 : i32
    %c0_i32_0 = arith.constant 0 : i32
    return %1, %c0_i32 : i32, i32
  }
  func.func @transform_2(%arg0: i32, %arg1: i32) -> (i32, i32, i32) {
    %c0_i32 = arith.constant 0 : i32
    %c0_i32_0 = arith.constant 0 : i32
    %c0_i32_1 = arith.constant 0 : i32
    return %arg0, %c0_i32, %c0_i32_0 : i32, i32, i32
  }
  func.func @transform_3(%arg0: i32, %arg1: i32) -> (i32, i32, i32) {
    %c0_i32 = arith.constant 0 : i32
    %c0_i32_0 = arith.constant 0 : i32
    %c0_i32_1 = arith.constant 0 : i32
    return %arg0, %c0_i32, %c0_i32_0 : i32, i32, i32
  }
}

</mosaic_0001>

<bundles_post_ra>
// kernel: tpu_custom_call.1
= control target key start
LH: loop header
LB: loop body
LE: loop exit
PB: predicated region body
PF: predicated region fallthrough
CT: control target
= control target key end

     0   :  { %s2100_s0 = inlined_call_operand.hbm [shape: f32[16,1024], index: 0, kind: input, shape index: {}]   ;;  %s2101_s1 = inlined_call_operand.hbm [shape: bf16[1024,256], index: 1, kind: input, shape index: {}]   ;;  %s2102_s2 = inlined_call_operand.hbm [shape: f32[2,16,256], index: 2, kind: output, shape index: {0}]   ;;  %s2103_s3 = inlined_call_operand.hbm [shape: f32[2,16,16], index: 3, kind: output, shape index: {1}]  }
   0x1   :  { %2105 = sst [smem:[#allocation18_spill]] %s2100_s0 }
   0x2   :  { %9 = vsyncpa [#allocation5], 0 }
   0x3   :  { %11 = vsyncpa [#allocation5 + $0x1], 0 }
   0x4   :  { %12 = vsyncpa [#allocation8], 0 }
   0x5   :  { %14 = vsyncpa [#allocation8 + $0x1], 0 }
   0x6   :  { %15 = vsyncpa [#allocation6], 0 }
   0x7   :  { %17 = vsyncpa [#allocation6 + $0x1], 0 }
   0x8   :  { %18 = vsyncpa [#allocation11], 0 }
   0x9   :  { %20 = vsyncpa [#allocation11 + $0x1], 0  ;;  %s1730_s12 = smov 0   ;;  %s1732_s13 = smov 0  }
   0xa   :  { %s1734_s14 = smov 0   ;;  %s1736_s15 = smov 0  }
   0xb   :  { %s1738_s16 = smov 0   ;;  %s1740_s17 = smov 0  }
   0xc LB: > { %s1089_s18 = sadd.s32 4294967295, %s1698_s17   ;;  %s1090_s19 = sadd.s32 4294967294, %s1698_s17   ;;  %s1698_s17 = sphi %s1740_s17, %s26_s17   ;;  %s1694_s16 = sphi %s1738_s16, %s2120_s16   ;;  %s1690_s15 = sphi %s1736_s15, %s2119_s15   ;;  %s1686_s14 = sphi %s1734_s14, %s2118_s14   ;;  %s1682_s13 = sphi %s1732_s13, %s2117_s13   ;;  %s1678_s12 = sphi %s1730_s12, %s2116_s12  }
   0xd   : > { %s38_s20 = sadd.s32 1, %s1694_s16  ;;  %s47_s21 = sadd.s32 1, %s1686_s14 }
   0xe   : > { %p40_p0 = scmp.ge.s32.totalorder %s38_s20, 2  ;;  %p54_p1 = scmp.ne.s32.totalorder %s1686_s14, %s1682_s13 }
   0xf   : > { %p55_p2 = scmp.eq.s32.totalorder %s1698_s17, 0  ;;  %p60_p3 = scmp.ne.s32.totalorder %s1682_s13, %s1678_s12 }
  0x10   : > { %s2122_s20 = smov (%p40_p0, %s38_s20), 0  ;;  %p61_p5 = scmp.eq.s32.totalorder %s1089_s18, 0 }
  0x11   : > { %2106 = sst [smem:[#allocation16_spill]] %s2122_s20  ;;  %p1771_p4 = por %p55_p2, %p54_p1 }
  0x12   : > { %s44_s23 = ssub.s32 %s1694_s16, %s2122_s20  ;;  %p112_p6 = scmp.eq.s32.totalorder %s1089_s18, 1 }
  0x13   : > { %p45_p7 = scmp.eq.s32.totalorder %s44_s23, 0  ;;  %p1777_p8 = por %p61_p5, %p60_p3 }
  0x14   : > { %p1781_p9 = por %p112_p6, %p54_p1  ;;  %p118_p10 = scmp.eq.s32.totalorder %s1090_s19, 1 }
  0x15   : > { %s1786_s26 = scalar_select %p45_p7, %s1686_s14, %s47_s21  }
  0x16   : > { %p1788_p11 = por %p118_p10, %p60_p3  ;;  %p1092_p12 = scmp.ge.s32.totalorder %s1698_s17, 2 }
  0x17   : > { %2110 = sst [smem:[#allocation17_spill]] %s1786_s26  ;;  %p1460_p13 = scmp.lt.s32.totalorder %s1698_s17, 2 }
  0x18   : > { %s1795_s28 = sand.u32 1, %s1686_s14   ;;  %s1369_s30 = sshll.u32 %s1694_s16, 5 }
  0x19   : > { %s1093_s29 = sshll.u32 %s1795_s28, 6  ;;  %s2112_s0 = sld [smem:[#allocation18_spill]] }
  0x1a   : > { %s168_s7 = scalar_lea.vmem [#allocation4], %s1093_s29  ;;  %p1804_p0 = pnand %p1460_p13, %p1771_p4 }
  0x1b   : > { %s177_s8 = sshll.u32 %s168_s7, 4  ;;  %s165_s11 = scalar_lea.sflag [#allocation5], %s1795_s28  ;;  %s178_s8 = int_to_ptr.vmem [resolvable:$true] %s177_s8 }
  0x1c   : > { %s1700_s18 = smov 1024   ;;  %s1701_s19 = smov 512  }
  0x1d   : > { %s1702_s21 = smov 32   ;;  %p1100_p1 = scmp.ge.s32.totalorder %s1698_s17, 1 }
  0x1e   : > { %p209_p2 = scmp.lt.s32.totalorder %s1698_s17, 3  ;;  %s1096_s23 = sshll.u32 %s1795_s28, 9 }
  0x1f   : > { %s174_s6 = scalar_lea.hbm %s2112_s0, %s1369_s30  ;;  %s1371_s29 = sshll.u32 %s1694_s16, 9 }
  0x20   : > { %s175_s9 = sshll.u32 %s174_s6, 4  ;;  %p210_p3 = pnand %p1100_p1, %p209_p2  ;;  %s176_s9 = int_to_ptr.hbm [resolvable:$true] %s175_s9 }
  0x21   : > { %1449 = dma.hbm_to_vmem [thread:$0]  (!%p1804_p0), %s176_s9, 1024, %s178_s8, %s165_s11, %s1700_s18, %s1701_s19, %s1702_s21  }
  0x22   : > { %s191_s30 = scalar_lea.vmem [#allocation7], %s1096_s23  ;;  %s198_s6 = scalar_lea.hbm %s2101_s1, %s1371_s29 }
  0x23   : > { %s201_s22 = sshll.u32 %s191_s30, 4  ;;  %s199_s7 = sshll.u32 %s198_s6, 4  ;;  %s202_s22 = int_to_ptr.vmem [resolvable:$true] %s201_s22  ;;  %s200_s7 = int_to_ptr.hbm [resolvable:$true] %s199_s7 }
  0x24   : > { %s188_s0 = scalar_lea.sflag [#allocation8], %s1795_s28  ;;  %s1703_s20 = smov 128  }
  0x25   : > { %s1704_s26 = smov 8   ;;  %213 = sbr.rel (%p210_p3) target bundleno = 288 (0x120), region = 28 }
  0x26   : > { %1452 = dma.hbm_to_vmem [thread:$0]  (!%p1804_p0), %s200_s7, 8192, %s202_s22, %s188_s0, %s1703_s20, %s1703_s20, %s1704_s26  }
  0x27   : > { %s1822_s8 = sand.u32 (!%p210_p3), 1, %s1682_s13  }
  0x28   : > { %s1101_s9 = sshll.u32 (!%p210_p3), %s1822_s8, 6  ;;  %s216_s11 = scalar_lea.sflag (!%p210_p3), [#allocation5], %s1822_s8 }
  0x29   : > { %s1826_s18 = scalar_lea.vmem (!%p210_p3), [#allocation4], %s1101_s9 }
  0x2a   : > { %1661 = dma.done.wait (%p1777_p8), %s216_s11, 1024  }
  0x2b   : > { %1663 = vsyncadd (%p1777_p8), %s216_s11, 4294966272  ;;  %s1102_s0 = sshll.u32 %s1822_s8, 9  ;;  %s226_s20 = scalar_lea.sflag [#allocation8], %s1822_s8 }
  0x2c   : > { %s1834_s26 = scalar_lea.vmem [#allocation7], %s1102_s0 }
  0x2d   : > { %1665 = dma.done.wait (%p1777_p8), %s226_s20, 8192  }
  0x2e   : > { %1667 = vsyncadd (%p1777_p8), %s226_s20, 4294959104  ;;  %v1163_v0 = vld [vmem:[%s1834_s26 + $0x70] sm:$0xf]  ;;  %v1387_v1 = vld [vmem:[%s1834_s26 + $0x74] sm:$0xf0]  ;;  %s1103_s24 = sshll.u32 %s1822_s8, 5 }
  0x2f   : > { %v1227_v2 = vld [vmem:[%s1834_s26 + $0xf0] sm:$0xf]  ;;  %v1164_v3 = vor.u32 %v1387_v1, %v1163_v0  ;;  %v1403_v4 = vld [vmem:[%s1834_s26 + $0xf4] sm:$0xf0]  ;;  %v1155_v11 = vld [vmem:[%s1834_s26 + $0x60] sm:$0xf] }
  0x30   : > { %v1291_v5 = vld [vmem:[%s1834_s26 + $0x170] sm:$0xf]  ;;  %v1419_v6 = vld [vmem:[%s1834_s26 + $0x174] sm:$0xf0]  ;;  %v1228_v7 = vor.u32 %v1403_v4, %v1227_v2  ;;  %v1385_v13 = vld [vmem:[%s1834_s26 + $0x64] sm:$0xf0] }
  0x31   : > { %v1292_v8 = vor.u32 %v1419_v6, %v1291_v5  ;;  %v1355_v9 = vld [vmem:[%s1834_s26 + $0x1f0] sm:$0xf]  ;;  %v1435_v10 = vld [vmem:[%s1834_s26 + $0x1f4] sm:$0xf0]  ;;  %678 = vmatpush.bf16.msra.mxu0 %v1164_v3  ;;  %v1219_v14 = vld [vmem:[%s1834_s26 + $0xe0] sm:$0xf]  ;;  %v1156_v16 = vor.u32 %v1385_v13, %v1155_v11 }
  0x32   : > { %v1356_v12 = vor.u32 %v1435_v10, %v1355_v9  ;;  %v1401_v15 = vld [vmem:[%s1834_s26 + $0xe4] sm:$0xf0]  ;;  %692 = vmatpush.bf16.msra.mxu1 %v1228_v7  ;;  %v1283_v18 = vld [vmem:[%s1834_s26 + $0x160] sm:$0xf]  ;;  %v1147_v23 = vld [vmem:[%s1834_s26 + $0x50] sm:$0xf] }
  0x33   : > { %706 = vmatpush.bf16.msra.mxu2 %v1292_v8  ;;  %v1220_v17 = vor.u32 %v1401_v15, %v1219_v14  ;;  %v1417_v19 = vld [vmem:[%s1834_s26 + $0x164] sm:$0xf0]  ;;  %v1347_v20 = vld [vmem:[%s1834_s26 + $0x1e0] sm:$0xf]  ;;  %v1383_v24 = vld [vmem:[%s1834_s26 + $0x54] sm:$0xf0] }
  0x34   : > { %720 = vmatpush.bf16.msra.mxu3 %v1356_v12  ;;  %v1284_v21 = vor.u32 %v1417_v19, %v1283_v18  ;;  %v1433_v22 = vld [vmem:[%s1834_s26 + $0x1e4] sm:$0xf0]  ;;  %v1211_v26 = vld [vmem:[%s1834_s26 + $0xd0] sm:$0xf]  ;;  %v1399_v27 = vld [vmem:[%s1834_s26 + $0xd4] sm:$0xf0]  ;;  %v1148_v29 = vor.u32 %v1383_v24, %v1147_v23 }
  0x35   : > { %v1348_v25 = vor.u32 %v1433_v22, %v1347_v20  ;;  %v1275_v28 = vld [vmem:[%s1834_s26 + $0x150] sm:$0xf]  ;;  %679 = vmatpush.bf16.msra.mxu0 %v1156_v16  ;;  %v1415_v30 = vld [vmem:[%s1834_s26 + $0x154] sm:$0xf0]  ;;  %v1212_v33 = vor.u32 %v1399_v27, %v1211_v26  ;;  %v1139_v35 = vld [vmem:[%s1834_s26 + $0x40] sm:$0xf] }
  0x36   : > { %v1339_v31 = vld [vmem:[%s1834_s26 + $0x1d0] sm:$0xf]  ;;  %v1431_v32 = vld [vmem:[%s1834_s26 + $0x1d4] sm:$0xf0]  ;;  %693 = vmatpush.bf16.msra.mxu1 %v1220_v17  ;;  %v1276_v34 = vor.u32 %v1415_v30, %v1275_v28  ;;  %v1381_v36 = vld [vmem:[%s1834_s26 + $0x44] sm:$0xf0] }
  0x37   : > { %707 = vmatpush.bf16.msra.mxu2 %v1284_v21  ;;  %v1203_v37 = vld [vmem:[%s1834_s26 + $0xc0] sm:$0xf]  ;;  %v1340_v38 = vor.u32 %v1431_v32, %v1339_v31  ;;  %v1397_v39 = vld [vmem:[%s1834_s26 + $0xc4] sm:$0xf0]  ;;  %v1140_v44 = vor.u32 %v1381_v36, %v1139_v35  ;;  %v1131_v47 = vld [vmem:[%s1834_s26 + $0x30] sm:$0xf] }
  0x38   : > { %721 = vmatpush.bf16.msra.mxu3 %v1348_v25  ;;  %v1267_v40 = vld [vmem:[%s1834_s26 + $0x140] sm:$0xf]  ;;  %v1413_v41 = vld [vmem:[%s1834_s26 + $0x144] sm:$0xf0]  ;;  %v1204_v45 = vor.u32 %v1397_v39, %v1203_v37  ;;  %v1379_v48 = vld [vmem:[%s1834_s26 + $0x34] sm:$0xf0] }
  0x39   : > { %v1331_v42 = vld [vmem:[%s1834_s26 + $0x1c0] sm:$0xf]  ;;  %v1429_v43 = vld [vmem:[%s1834_s26 + $0x1c4] sm:$0xf0]  ;;  %680 = vmatpush.bf16.msra.mxu0 %v1148_v29  ;;  %v1268_v46 = vor.u32 %v1413_v41, %v1267_v40  ;;  %v1195_v49 = vld [vmem:[%s1834_s26 + $0xb0] sm:$0xf]  ;;  %v1132_v56 = vor.u32 %v1379_v48, %v1131_v47 }
  0x3a   : > { %694 = vmatpush.bf16.msra.mxu1 %v1212_v33  ;;  %v1332_v50 = vor.u32 %v1429_v43, %v1331_v42  ;;  %v1395_v51 = vld [vmem:[%s1834_s26 + $0xb4] sm:$0xf0]  ;;  %v1259_v52 = vld [vmem:[%s1834_s26 + $0x130] sm:$0xf]  ;;  %v1123_v59 = vld [vmem:[%s1834_s26 + $0x20] sm:$0xf] }
  0x3b   : > { %708 = vmatpush.bf16.msra.mxu2 %v1276_v34  ;;  %v1411_v53 = vld [vmem:[%s1834_s26 + $0x134] sm:$0xf0]  ;;  %v1323_v54 = vld [vmem:[%s1834_s26 + $0x1b0] sm:$0xf]  ;;  %v1196_v57 = vor.u32 %v1395_v51, %v1195_v49  ;;  %v1377_v60 = vld [vmem:[%s1834_s26 + $0x24] sm:$0xf0] }
  0x3c   : > { %722 = vmatpush.bf16.msra.mxu3 %v1340_v38  ;;  %v1427_v55 = vld [vmem:[%s1834_s26 + $0x1b4] sm:$0xf0]  ;;  %v1260_v58 = vor.u32 %v1411_v53, %v1259_v52  ;;  %v1187_v61 = vld [vmem:[%s1834_s26 + $0xa0] sm:$0xf]  ;;  %v1393_v63 = vld [vmem:[%s1834_s26 + $0xa4] sm:$0xf0]  ;;  %v1124_v4 = vor.u32 %v1377_v60, %v1123_v59 }
  0x3d   : > { %681 = vmatpush.bf16.msra.mxu0 %v1140_v44  ;;  %v1324_v62 = vor.u32 %v1427_v55, %v1323_v54  ;;  %v1251_v0 = vld [vmem:[%s1834_s26 + $0x120] sm:$0xf]  ;;  %v1409_v1 = vld [vmem:[%s1834_s26 + $0x124] sm:$0xf0]  ;;  %v1188_v5 = vor.u32 %v1393_v63, %v1187_v61  ;;  %v1115_v7 = vld [vmem:[%s1834_s26 + $0x10] sm:$0xf] }
  0x3e   : > { %695 = vmatpush.bf16.msra.mxu1 %v1204_v45  ;;  %v1315_v2 = vld [vmem:[%s1834_s26 + $0x1a0] sm:$0xf]  ;;  %v1425_v3 = vld [vmem:[%s1834_s26 + $0x1a4] sm:$0xf0]  ;;  %v1252_v6 = vor.u32 %v1409_v1, %v1251_v0  ;;  %v1375_v8 = vld [vmem:[%s1834_s26 + $0x14] sm:$0xf0] }
  0x3f   : > { %709 = vmatpush.bf16.msra.mxu2 %v1268_v46  ;;  %v1179_v9 = vld [vmem:[%s1834_s26 + $0x90] sm:$0xf]  ;;  %v1316_v10 = vor.u32 %v1425_v3, %v1315_v2  ;;  %v1391_v11 = vld [vmem:[%s1834_s26 + $0x94] sm:$0xf0]  ;;  %v1107_v16 = vld [vmem:[%s1834_s26] sm:$0xf]  ;;  %v1116_v17 = vor.u32 %v1375_v8, %v1115_v7 }
  0x40   : > { %723 = vmatpush.bf16.msra.mxu3 %v1332_v50  ;;  %v1243_v12 = vld [vmem:[%s1834_s26 + $0x110] sm:$0xf]  ;;  %v1407_v13 = vld [vmem:[%s1834_s26 + $0x114] sm:$0xf0]  ;;  %v1373_v18 = vld [vmem:[%s1834_s26 + $0x4] sm:$0xf0]  ;;  %v1180_v21 = vor.u32 %v1391_v11, %v1179_v9 }
  0x41   : > { %682 = vmatpush.bf16.msra.mxu0 %v1132_v56  ;;  %v1307_v14 = vld [vmem:[%s1834_s26 + $0x190] sm:$0xf]  ;;  %v1423_v15 = vld [vmem:[%s1834_s26 + $0x194] sm:$0xf0]  ;;  %v1171_v19 = vld [vmem:[%s1834_s26 + $0x80] sm:$0xf]  ;;  %v1244_v22 = vor.u32 %v1407_v13, %v1243_v12  ;;  %v1108_v33 = vor.u32 %v1373_v18, %v1107_v16 }
  0x42   : > { %696 = vmatpush.bf16.msra.mxu1 %v1196_v57  ;;  %v1389_v20 = vld [vmem:[%s1834_s26 + $0x84] sm:$0xf0]  ;;  %v1235_v23 = vld [vmem:[%s1834_s26 + $0x100] sm:$0xf]  ;;  %v1308_v26 = vor.u32 %v1423_v15, %v1307_v14  ;;  %v1386_v28 = vld [vmem:[%s1834_s26 + $0x74] sm:$0xf] }
  0x43   : > { %710 = vmatpush.bf16.msra.mxu2 %v1260_v58  ;;  %v1405_v24 = vld [vmem:[%s1834_s26 + $0x104] sm:$0xf0]  ;;  %v1299_v25 = vld [vmem:[%s1834_s26 + $0x180] sm:$0xf]  ;;  %v1165_v29 = vld [vmem:[%s1834_s26 + $0x78] sm:$0xf0]  ;;  %v1172_v37 = vor.u32 %v1389_v20, %v1171_v19 }
  0x44   : > { %724 = vmatpush.bf16.msra.mxu3 %v1324_v62  ;;  %v1421_v27 = vld [vmem:[%s1834_s26 + $0x184] sm:$0xf0]  ;;  %v1402_v30 = vld [vmem:[%s1834_s26 + $0xf4] sm:$0xf]  ;;  %v1229_v31 = vld [vmem:[%s1834_s26 + $0xf8] sm:$0xf0]  ;;  %v1236_v38 = vor.u32 %v1405_v24, %v1235_v23  ;;  %v1168_v44 = vor.u32 %v1386_v28, %v1165_v29 }
  0x45   : > { %683 = vmatpush.bf16.msra.mxu0 %v1124_v4  ;;  %v1418_v32 = vld [vmem:[%s1834_s26 + $0x174] sm:$0xf]  ;;  %v1293_v34 = vld [vmem:[%s1834_s26 + $0x178] sm:$0xf0]  ;;  %v1384_v39 = vld [vmem:[%s1834_s26 + $0x64] sm:$0xf]  ;;  %v1300_v43 = vor.u32 %v1421_v27, %v1299_v25  ;;  %v1232_v49 = vor.u32 %v1402_v30, %v1229_v31 }
  0x46   : > { %697 = vmatpush.bf16.msra.mxu1 %v1188_v5  ;;  %v1434_v35 = vld [vmem:[%s1834_s26 + $0x1f4] sm:$0xf]  ;;  %v1357_v36 = vld [vmem:[%s1834_s26 + $0x1f8] sm:$0xf0]  ;;  %v1157_v40 = vld [vmem:[%s1834_s26 + $0x68] sm:$0xf0]  ;;  %v1296_v50 = vor.u32 %v1418_v32, %v1293_v34 }
  0x47   : > { %711 = vmatpush.bf16.msra.mxu2 %v1252_v6  ;;  %v1915_v41 = vld [vmem:[%s1826_s18 + $0x10] sm:$0xff]  ;;  %v1400_v45 = vld [vmem:[%s1834_s26 + $0xe4] sm:$0xf]  ;;  %v1221_v46 = vld [vmem:[%s1834_s26 + $0xe8] sm:$0xf0]  ;;  %v1360_v54 = vor.u32 %v1434_v35, %v1357_v36  ;;  %v1160_v63 = vor.u32 %v1384_v39, %v1157_v40  ;;  %s2033_s28 = scalar_lea.vmem [#allocation9], %s1103_s24 }
  0x48   : > { %725 = vmatpush.bf16.msra.mxu3 %v1316_v10  ;;  %v1918_v42 = vld [vmem:[%s1826_s18 + $0x30] sm:$0xff]  ;;  %v1416_v47 = vld [vmem:[%s1834_s26 + $0x164] sm:$0xf]  ;;  %v1285_v48 = vld [vmem:[%s1834_s26 + $0x168] sm:$0xf0]  ;;  %v1224_v1 = vor.u32 %v1400_v45, %v1221_v46  ;;  %vm275_vm0 = vcmask 130048  }
  0x49   : > { %684 = vmatpush.bf16.msra.mxu0 %v1116_v17  ;;  %v1925_v51 = vld [vmem:[%s1826_s18 + $0x18] sm:$0xff]  ;;  %v1931_v53 = vld [vmem:[%s1826_s18] sm:$0xff]  ;;  %v1935_v55 = vpack.c.bf16 %v1918_v42, %v1915_v41  ;;  %v1941_v57 = vld [vmem:[%s1826_s18 + $0x8] sm:$0xff]  ;;  %v1288_v2 = vor.u32 %v1416_v47, %v1285_v48  ;;  %s1436_s10 = sshll.u32 %s1690_s15, 5  ;;  %s930_s29 = sshll.u32 %s2033_s28, 4  ;;  %s931_s29 = int_to_ptr.vmem [resolvable:$true] %s930_s29 }
  0x4a   : > { %698 = vmatpush.bf16.msra.mxu1 %v1180_v21  ;;  %v1928_v52 = vld [vmem:[%s1826_s18 + $0x38] sm:$0xff]  ;;  %v1938_v56 = vld [vmem:[%s1826_s18 + $0x20] sm:$0xff]  ;;  %v1944_v58 = vld [vmem:[%s1826_s18 + $0x28] sm:$0xff]  ;;  %s929_s23 = scalar_lea.hbm %s2102_s2, %s1436_s10  ;;  %s913_s22 = scalar_lea.sflag [#allocation6], %s1822_s8 }
  0x4b   : > { %712 = vmatpush.bf16.msra.mxu2 %v1244_v22  ;;  %v1432_v59 = vld [vmem:[%s1834_s26 + $0x1e4] sm:$0xf]  ;;  %v1349_v60 = vld [vmem:[%s1834_s26 + $0x1e8] sm:$0xf0]  ;;  %v1950_v61 = vpack.c.bf16 %v1928_v52, %v1925_v51  ;;  %v1954_v62 = vpack.c.bf16 %v1938_v56, %v1931_v53  ;;  %v1958_v0 = vpack.c.bf16 %v1944_v58, %v1941_v57  ;;  %v1382_v3 = vld [vmem:[%s1834_s26 + $0x54] sm:$0xf] }
  0x4c   : > { %726 = vmatpush.bf16.msra.mxu3 %v1308_v26  ;;  %v1149_v4 = vld [vmem:[%s1834_s26 + $0x58] sm:$0xf0]  ;;  %v1398_v5 = vld [vmem:[%s1834_s26 + $0xd4] sm:$0xf]  ;;  %v1352_v6 = vor.u32 %v1432_v59, %v1349_v60  ;;  %v1380_v15 = vld [vmem:[%s1834_s26 + $0x44] sm:$0xf] }
  0x4d   : > { %685 = vmatpush.bf16.msra.mxu0 %v1108_v33  ;;  %v1213_v7 = vld [vmem:[%s1834_s26 + $0xd8] sm:$0xf0]  ;;  %v1414_v8 = vld [vmem:[%s1834_s26 + $0x154] sm:$0xf]  ;;  %v1152_v12 = vor.u32 %v1382_v3, %v1149_v4  ;;  %v1141_v16 = vld [vmem:[%s1834_s26 + $0x48] sm:$0xf0] }
  0x4e   : > { %699 = vmatpush.bf16.msra.mxu1 %v1172_v37  ;;  %v1277_v9 = vld [vmem:[%s1834_s26 + $0x158] sm:$0xf0]  ;;  %v1430_v10 = vld [vmem:[%s1834_s26 + $0x1d4] sm:$0xf]  ;;  %v1216_v13 = vor.u32 %v1398_v5, %v1213_v7  ;;  %v1396_v17 = vld [vmem:[%s1834_s26 + $0xc4] sm:$0xf]  ;;  %v1144_v24 = vor.u32 %v1380_v15, %v1141_v16 }
  0x4f   : > { %713 = vmatpush.bf16.msra.mxu2 %v1236_v38  ;;  %v1341_v11 = vld [vmem:[%s1834_s26 + $0x1d8] sm:$0xf0]  ;;  %v1280_v14 = vor.u32 %v1414_v8, %v1277_v9  ;;  %v1205_v19 = vld [vmem:[%s1834_s26 + $0xc8] sm:$0xf0]  ;;  %v1412_v20 = vld [vmem:[%s1834_s26 + $0x144] sm:$0xf] }
  0x50   : > { %727 = vmatpush.bf16.msra.mxu3 %v1300_v43  ;;  %686 = vmatmul.bf16.vlgmr.msra.gmra.mxu0 %v1954_v62  ;;  %v1344_v18 = vor.u32 %v1430_v10, %v1341_v11  ;;  %v1269_v21 = vld [vmem:[%s1834_s26 + $0x148] sm:$0xf0]  ;;  %v1428_v22 = vld [vmem:[%s1834_s26 + $0x1c4] sm:$0xf]  ;;  %v1208_v25 = vor.u32 %v1396_v17, %v1205_v19  ;;  %v1378_v27 = vld [vmem:[%s1834_s26 + $0x34] sm:$0xf] }
  0x51   : > { %734 = vmatpush.bf16.msrb.mxu0 %v1168_v44  ;;  %700 = vmatmul.bf16.vlgmr.msra.gmra.mxu1 %v1958_v0  ;;  %v1333_v23 = vld [vmem:[%s1834_s26 + $0x1c8] sm:$0xf0]  ;;  %v1272_v26 = vor.u32 %v1412_v20, %v1269_v21  ;;  %v1133_v28 = vld [vmem:[%s1834_s26 + $0x38] sm:$0xf0]  ;;  %v1394_v29 = vld [vmem:[%s1834_s26 + $0xb4] sm:$0xf] }
  0x52   : > { %748 = vmatpush.bf16.msrb.mxu1 %v1232_v49  ;;  %714 = vmatmul.bf16.vlgmr.msra.gmra.mxu2 %v1935_v55  ;;  %v1336_v30 = vor.u32 %v1428_v22, %v1333_v23  ;;  %v1197_v31 = vld [vmem:[%s1834_s26 + $0xb8] sm:$0xf0]  ;;  %v1410_v32 = vld [vmem:[%s1834_s26 + $0x134] sm:$0xf]  ;;  %v1136_v36 = vor.u32 %v1378_v27, %v1133_v28  ;;  %v1376_v39 = vld [vmem:[%s1834_s26 + $0x24] sm:$0xf] }
  0x53   : > { %762 = vmatpush.bf16.msrb.mxu2 %v1296_v50  ;;  %728 = vmatmul.bf16.vlgmr.msra.gmra.mxu3 %v1950_v61  ;;  %v1261_v33 = vld [vmem:[%s1834_s26 + $0x138] sm:$0xf0]  ;;  %v1426_v34 = vld [vmem:[%s1834_s26 + $0x1b4] sm:$0xf]  ;;  %v1200_v37 = vor.u32 %v1394_v29, %v1197_v31  ;;  %v1125_v40 = vld [vmem:[%s1834_s26 + $0x28] sm:$0xf0] }
  0x54   : > { %776 = vmatpush.bf16.msrb.mxu3 %v1360_v54  ;;  %v1325_v35 = vld [vmem:[%s1834_s26 + $0x1b8] sm:$0xf0]  ;;  %v1264_v38 = vor.u32 %v1410_v32, %v1261_v33  ;;  %v1392_v43 = vld [vmem:[%s1834_s26 + $0xa4] sm:$0xf]  ;;  %v1189_v45 = vld [vmem:[%s1834_s26 + $0xa8] sm:$0xf0]  ;;  %v1128_v50 = vor.u32 %v1376_v39, %v1125_v40 }
  0x55   : > { %735 = vmatpush.bf16.msrb.mxu0 %v1160_v63  ;;  %v1328_v44 = vor.u32 %v1426_v34, %v1325_v35  ;;  %v1408_v46 = vld [vmem:[%s1834_s26 + $0x124] sm:$0xf]  ;;  %v1253_v47 = vld [vmem:[%s1834_s26 + $0x128] sm:$0xf0]  ;;  %v1192_v54 = vor.u32 %v1392_v43, %v1189_v45  ;;  %v1374_v60 = vld [vmem:[%s1834_s26 + $0x14] sm:$0xf] }
  0x56   : > { %749 = vmatpush.bf16.msrb.mxu1 %v1224_v1  ;;  %v1424_v48 = vld [vmem:[%s1834_s26 + $0x1a4] sm:$0xf]  ;;  %v1317_v49 = vld [vmem:[%s1834_s26 + $0x1a8] sm:$0xf0]  ;;  %v1256_v59 = vor.u32 %v1408_v46, %v1253_v47  ;;  %v1117_v63 = vld [vmem:[%s1834_s26 + $0x18] sm:$0xf0] }
  0x57   : > { %763 = vmatpush.bf16.msrb.mxu2 %v1288_v2  ;;  %v1390_v1 = vld [vmem:[%s1834_s26 + $0x94] sm:$0xf]  ;;  %v1320_v2 = vor.u32 %v1424_v48, %v1317_v49  ;;  %v1181_v3 = vld [vmem:[%s1834_s26 + $0x98] sm:$0xf0]  ;;  %v1120_v8 = vor.u32 %v1374_v60, %v1117_v63  ;;  %v1372_v11 = vld [vmem:[%s1834_s26 + $0x4] sm:$0xf] }
  0x58   : > { %777 = vmatpush.bf16.msrb.mxu3 %v1352_v6  ;;  %v1406_v4 = vld [vmem:[%s1834_s26 + $0x114] sm:$0xf]  ;;  %v1245_v5 = vld [vmem:[%s1834_s26 + $0x118] sm:$0xf0]  ;;  %v1184_v9 = vor.u32 %v1390_v1, %v1181_v3  ;;  %v1173_v15 = vld [vmem:[%s1834_s26 + $0x88] sm:$0xf0] }
  0x59   : > { %736 = vmatpush.bf16.msrb.mxu0 %v1152_v12  ;;  %v1422_v6 = vld [vmem:[%s1834_s26 + $0x194] sm:$0xf]  ;;  %v1309_v7 = vld [vmem:[%s1834_s26 + $0x198] sm:$0xf0]  ;;  %v1248_v10 = vor.u32 %v1406_v4, %v1245_v5  ;;  %v1109_v12 = vld [vmem:[%s1834_s26 + $0x8] sm:$0xf0] }
  0x5a   : > { %750 = vmatpush.bf16.msrb.mxu1 %v1216_v13  ;;  %v1388_v13 = vld [vmem:[%s1834_s26 + $0x84] sm:$0xf]  ;;  %v1237_v17 = vld [vmem:[%s1834_s26 + $0x108] sm:$0xf0]  ;;  %v1112_v20 = vor.u32 %v1372_v11, %v1109_v12  ;;  %s932_s30 = sshll.u32 %s929_s23, 4  ;;  %s1600_s9 = scalar_lea.hbm %s2102_s2, 64  ;;  %s933_s30 = int_to_ptr.hbm [resolvable:$true] %s932_s30 }
  0x5b   : > { %764 = vmatpush.bf16.msrb.mxu2 %v1280_v14  ;;  %v1312_v14 = vor.u32 %v1422_v6, %v1309_v7  ;;  %v1404_v16 = vld [vmem:[%s1834_s26 + $0x104] sm:$0xf]  ;;  %v1301_v19 = vld [vmem:[%s1834_s26 + $0x188] sm:$0xf0]  ;;  %v1176_v21 = vor.u32 %v1388_v13, %v1173_v15  ;;  %s1594_s4 = sshra.s32 %s933_s30, 4  ;;  %s1595_s4 = int_to_ptr.hbm [resolvable:$true] %s1594_s4 }
  0x5c   : > { %778 = vmatpush.bf16.msrb.mxu3 %v1344_v18  ;;  %v1420_v18 = vld [vmem:[%s1834_s26 + $0x184] sm:$0xf]  ;;  %v1240_v22 = vor.u32 %v1404_v16, %v1237_v17  ;;  %s1596_s5 = scalar_lea.hbm %s1595_s4, 32  ;;  %p1601_p7 = scmp.lt.s32.totalorder %s1595_s4, %s2102_s2 }
  0x5d   : > { %737 = vmatpush.bf16.msrb.mxu0 %v1144_v24  ;;  %v1304_v23 = vor.u32 %v1420_v18, %v1301_v19  ;;  %p1597_p4 = scmp.ne.s32.totalorder %s1595_s4, %s1596_s5  ;;  %p1602_p8 = scmp.lt.s32.totalorder %s1600_s9, %s1596_s5 }
  0x5e   : > { %751 = vmatpush.bf16.msrb.mxu1 %v1208_v25 }
  0x5f   : > { %765 = vmatpush.bf16.msrb.mxu2 %v1272_v26  ;;  %v1705_v26 = vmov 0.0   ;;  %p1598_p5 = pnand %p1597_p4, %p1781_p9  ;;  %p1603_p10 = por %p1602_p8, %p1601_p7 }
  0x60   : > { %779 = vmatpush.bf16.msrb.mxu3 %v1336_v30  ;;  %276 = vst.msk [vmem:[#allocation3] sm:$0xff] %vm275_vm0, %v1705_v26 }
  0x61   : > { %738 = vmatpush.bf16.msrb.mxu0 %v1136_v36  ;;  %277 = vst.msk [vmem:[#allocation3 + $0x8] sm:$0xff] %vm275_vm0, %v1705_v26  ;;  %p1599_p6 = pneg %p1598_p5 }
  0x62   : > { %752 = vmatpush.bf16.msrb.mxu1 %v1200_v37 }
  0x63   : > { %766 = vmatpush.bf16.msrb.mxu2 %v1264_v38  ;;  %p1604_p13 = pnand %p1603_p10, %p1599_p6 }
  0x64   : > { %780 = vmatpush.bf16.msrb.mxu3 %v1328_v44 }
  0x65   : > { %739 = vmatpush.bf16.msrb.mxu0 %v1128_v50 }
  0x66   : > { %753 = vmatpush.bf16.msrb.mxu1 %v1192_v54 }
  0x67   : > { %767 = vmatpush.bf16.msrb.mxu2 %v1256_v59 }
  0x68   : > { %781 = vmatpush.bf16.msrb.mxu3 %v1320_v2 }
  0x69   : > { %740 = vmatpush.bf16.msrb.mxu0 %v1120_v8 }
  0x6a   : > { %754 = vmatpush.bf16.msrb.mxu1 %v1184_v9 }
  0x6b   : > { %768 = vmatpush.bf16.msrb.mxu2 %v1248_v10 }
  0x6c   : > { %782 = vmatpush.bf16.msrb.mxu3 %v1312_v14 }
  0x6d   : > { %741 = vmatpush.bf16.msrb.mxu0 %v1112_v20 }
  0x6e   : > { %755 = vmatpush.bf16.msrb.mxu1 %v1176_v21 }
  0x6f   : > { %769 = vmatpush.bf16.msrb.mxu2 %v1240_v22 }
  0x70   : > { %783 = vmatpush.bf16.msrb.mxu3 %v1304_v23  ;;  %742 = vmatmul.bf16.vlgmr.msrb.gmra.mxu0 %v1954_v62 }
  0x71   : > { %756 = vmatmul.bf16.vlgmr.msrb.gmra.mxu1 %v1958_v0  ;;  %814 = vmatpush.xpose.msra.mxu0 %v1938_v56 }
  0x72   : > { %770 = vmatmul.bf16.vlgmr.msrb.gmra.mxu2 %v1935_v55  ;;  %837 = vmatpush.xpose.msra.mxu1 %v1944_v58 }
  0x73   : > { %860 = vmatpush.xpose.msra.mxu2 %v1918_v42  ;;  %784 = vmatmul.bf16.vlgmr.msrb.gmra.mxu3 %v1950_v61 }
  0x74   : > { %883 = vmatpush.xpose.msra.mxu3 %v1928_v52 }
  0x75   : > { %815 = vmatpush.xpose.msra.mxu0 %v1931_v53 }
  0x76   : > { %838 = vmatpush.xpose.msra.mxu1 %v1941_v57 }
  0x77   : > { %861 = vmatpush.xpose.msra.mxu2 %v1915_v41 }
  0x78   : > { %884 = vmatpush.xpose.msra.mxu3 %v1925_v51 }
  0x80   : > { %816 = vmatmul.f32.vlgmr.msra.gmra.mxu0 %v1931_v53 }
  0x81   : > { %839 = vmatmul.f32.vlgmr.msra.gmra.mxu1 %v1941_v57 }
  0x82   : > { %862 = vmatmul.f32.vlgmr.msra.gmra.mxu2 %v1915_v41 }
  0x83   : > { %885 = vmatmul.f32.vlgmr.msra.gmra.mxu3 %v1925_v51 }
  0x88   : > { %819 = vmatmul.f32.gmra.mxu0 %v1938_v56 }
  0x89   : > { %842 = vmatmul.f32.gmra.mxu1 %v1944_v58 }
  0x8a   : > { %865 = vmatmul.f32.gmra.mxu2 %v1918_v42 }
  0x8b   : > { %888 = vmatmul.f32.gmra.mxu3 %v1928_v52 }
  0xcd   : > { %v687_v55 = vpop.f32.mrf.mxu0 }
  0xce   : > { %v701_v61 = vpop.f32.mrf.mxu1 }
  0xcf   : > { %v702_v62 = vadd.f32 %v701_v61, %v687_v55 }
  0xd5   : > { %v715_v0 = vpop.f32.mrf.mxu2  ;;  %v689_v25 = vpop.f32.mrf.mxu0 }
  0xd6   : > { %v716_v53 = vadd.f32 %v715_v0, %v702_v62  ;;  %v729_v24 = vpop.f32.mrf.mxu3  ;;  %v703_v57 = vpop.f32.mrf.mxu1 }
  0xd7   : > { %v704_v42 = vadd.f32 %v703_v57, %v689_v25 }
  0xd8   : > { %v730_v41 = vadd.f32 %v729_v24, %v716_v53 }
  0xda   : > { %904 = vst [vmem:[%s2033_s28] sm:$0xff] %v730_v41 }
  0xdd   : > { %v717_v51 = vpop.f32.mrf.mxu2 }
  0xde   : > { %v718_v56 = vadd.f32 %v717_v51, %v704_v42  ;;  %v731_v52 = vpop.f32.mrf.mxu3 }
  0xe0   : > { %v732_v58 = vadd.f32 %v731_v52, %v718_v56 }
  0xe2   : > { %906 = vst [vmem:[%s2033_s28 + $0x10] sm:$0xff] %v732_v58 }
  0xed   : > { %v743_v27 = vpop.f32.mrf.mxu0 }
  0xee   : > { %v757_v28 = vpop.f32.mrf.mxu1 }
  0xef   : > { %v758_v29 = vadd.f32 %v757_v28, %v743_v27 }
  0xf5   : > { %v771_v30 = vpop.f32.mrf.mxu2  ;;  %v745_v33 = vpop.f32.mrf.mxu0 }
  0xf6   : > { %v772_v31 = vadd.f32 %v771_v30, %v758_v29  ;;  %v785_v32 = vpop.f32.mrf.mxu3  ;;  %v759_v34 = vpop.f32.mrf.mxu1 }
  0xf7   : > { %v760_v36 = vadd.f32 %v759_v34, %v745_v33 }
  0xf8   : > { %v786_v35 = vadd.f32 %v785_v32, %v772_v31 }
  0xfa   : > { %905 = vst [vmem:[%s2033_s28 + $0x8] sm:$0xff] %v786_v35 }
  0xfd   : > { %v773_v37 = vpop.f32.mrf.mxu2  ;;  %v817_v40 = vpop.f32.mrf.mxu0 }
  0xfe   : > { %v774_v38 = vadd.f32 %v773_v37, %v760_v36  ;;  %v787_v39 = vpop.f32.mrf.mxu3  ;;  %v840_v43 = vpop.f32.mrf.mxu1 }
  0xff   : > { %v841_v45 = vadd.f32 %v840_v43, %v817_v40 }
 0x100   : > { %v788_v44 = vadd.f32 %v787_v39, %v774_v38 }
 0x102   : > { %907 = vst [vmem:[%s2033_s28 + $0x18] sm:$0xff] %v788_v44 }
 0x103   : > { %1607 = shalt.err (!%p1604_p13)
}
 0x104   : > { %s1706_s0 = smov 256   ;;  %s1707_s20 = smov 16   ;;  %v798_v49 = vld [vmem:[#allocation3] sm:$0xff]  ;;  %v799_v4 = vld [vmem:[#allocation3 + $0x8] sm:$0xff] }
 0x105   : > { %1442 = dma.vmem_to_hbm [thread:$0]  (%p1781_p9), %s931_s29, 512, %s933_s30, %s913_s22, %s1706_s0, %s1706_s0, %s1707_s20   ;;  %v863_v46 = vpop.f32.mrf.mxu2  ;;  %v820_v50 = vpop.f32.mrf.mxu0 }
 0x106   : > { %v864_v47 = vadd.f32 %v863_v46, %v841_v45  ;;  %v886_v48 = vpop.f32.mrf.mxu3  ;;  %v843_v54 = vpop.f32.mrf.mxu1  ;;  %s1104_s26 = sshll.u32 %s1822_s8, 4  ;;  %s1437_s24 = sshll.u32 %s1690_s15, 4 }
 0x107   : > { %v844_v63 = vadd.f32 %v843_v54, %v820_v50  ;;  %s946_s19 = scalar_lea.hbm %s2103_s3, %s1437_s24  ;;  %s262_s21 = scalar_lea.vmem [#allocation10], %s1104_s26 }
 0x108   : > { %v887_v59 = vadd.f32 %v886_v48, %v864_v47  ;;  %s947_s23 = sshll.u32 %s262_s21, 4  ;;  %s949_s29 = sshll.u32 %s946_s19, 4  ;;  %s948_s23 = int_to_ptr.vmem [resolvable:$true] %s947_s23  ;;  %s950_s29 = int_to_ptr.hbm [resolvable:$true] %s949_s29 }
 0x109   : > { %s918_s15 = scalar_lea.sflag [#allocation11], %s1822_s8  ;;  %s1622_s30 = sshra.s32 %s950_s29, 4  ;;  %s1623_s30 = int_to_ptr.hbm [resolvable:$true] %s1622_s30 }
 0x10a   : > { %v892_v60 = vadd.f32 %v887_v59, %v798_v49  ;;  %s1624_s22 = scalar_lea.hbm %s1623_s30, 16  ;;  %s1628_s6 = scalar_lea.hbm %s2103_s3, 32 }
 0x10b   : > { %p1625_p0 = scmp.ne.s32.totalorder %s1623_s30, %s1624_s22  ;;  %p1629_p3 = scmp.lt.s32.totalorder %s1623_s30, %s2103_s3 }
 0x10c   : > { %895 = vst.msk [vmem:[#allocation3] sm:$0xff] %vm275_vm0, %v892_v60  ;;  %p1630_p4 = scmp.lt.s32.totalorder %s1628_s6, %s1624_s22 }
 0x10d   : > { %v866_v1 = vpop.f32.mrf.mxu2  ;;  %p1626_p1 = pnand %p1625_p0, %p1781_p9 }
 0x10e   : > { %v867_v2 = vadd.f32 %v866_v1, %v844_v63  ;;  %v889_v3 = vpop.f32.mrf.mxu3  ;;  %p1631_p5 = por %p1630_p4, %p1629_p3 }
 0x10f   : > { %p1627_p2 = pneg %p1626_p1 }
 0x110   : > { %v890_v5 = vadd.f32 %v889_v3, %v867_v2 }
 0x111   : > { %p1632_p6 = pnand %p1631_p5, %p1627_p2 }
 0x112   : > { %v893_v6 = vadd.f32 %v890_v5, %v799_v4 }
 0x113   : > { %v908_v7 = vld [vmem:[#allocation3] sm:$0xff] }
 0x114   : > { %896 = vst.msk [vmem:[#allocation3 + $0x8] sm:$0xff] %vm275_vm0, %v893_v6 }
 0x115   : > { %910 = vst.msk [vmem:[%s262_s21] sm:$0xff] %vm275_vm0, %v908_v7 }
 0x11b   : > { %v909_v8 = vld [vmem:[#allocation3 + $0x8] sm:$0xff] }
 0x11c   : > { %911 = vst.msk [vmem:[%s262_s21 + $0x8] sm:$0xff] %vm275_vm0, %v909_v8 }
 0x11d   : > { %1635 = shalt.err (!%p1632_p6)
}
 0x11e   : > { %s1708_s8 = smov 128   ;;  %s1709_s11 = smov 8  }
 0x11f   : > { %1443 = dma.vmem_to_hbm [thread:$0]  (%p1781_p9), %s948_s23, 256, %s950_s29, %s918_s15, %s1708_s8, %s1708_s8, %s1709_s11  }
 0x120 PF: > { %s964_s18 = sand.u32 1, %s1678_s12   ;;  %p1454_p7 = pnand %p1092_p12, %p1788_p11 }
 0x121   : > { %s965_s0 = scalar_lea.sflag [#allocation6], %s964_s18 }
 0x122   : > { %p1455_p8 = pneg %p1454_p7 }
 0x124   : > { %1669 = dma.done.wait (%p1455_p8), %s965_s0, 512  }
 0x125   : > { %1671 = vsyncadd (%p1455_p8), %s965_s0, 4294966784  ;;  %s975_s20 = scalar_lea.sflag [#allocation11], %s964_s18 }
 0x126   : > { %1673 = dma.done.wait (%p1455_p8), %s975_s20, 256  }
 0x127   : > { %1675 = vsyncadd (%p1455_p8), %s975_s20, 4294967040  ;;  %s26_s17 = sadd.s32 1, %s1698_s17   ;;  %s2114_s25 = sld [smem:[#allocation17_spill]] }
 0x128   : > { %p23_p10 = scmp.ge.s32.totalorder %s26_s17, 4   ;;  %s2115_s26 = sld [smem:[#allocation16_spill]] }
 0x129   : > { %s2116_s12 = smov %s1682_s13  ;;  %s2117_s13 = smov %s1686_s14 }
 0x12a   : > { %s2119_s15 = smov %s1694_s16  ;;  %25 = sbr.rel (!%p23_p10) target bundleno = 12 (0xc), region = 111 }
 0x12d   : > { %s2118_s14 = smov %s2114_s25 }
 0x12e   : > { %s2120_s16 = smov %s2115_s26 }
 0x12f   :  { %981 = vsyncpa [#allocation5], 1 }
 0x130   :  { %983 = vsyncpa [#allocation5 + $0x1], 1 }
 0x131   :  { %984 = vsyncpa [#allocation8], 1 }
 0x132   :  { %986 = vsyncpa [#allocation8 + $0x1], 1 }
 0x133   :  { %987 = vsyncpa [#allocation6], 1 }
 0x134   :  { %989 = vsyncpa [#allocation6 + $0x1], 1 }
 0x135   :  { %990 = vsyncpa [#allocation11], 1 }
 0x136   :  { %992 = vsyncpa [#allocation11 + $0x1], 1 }

</bundles_post_ra>
